<compile_context>
chip_gen: v7x
topology: tpu7x:2x2x1
jax: 0.10.0
libtpu: 0.0.40
codegen_flags: <defaults>
</compile_context>

<pallas_src>
import functools
import math

import jax
import jax.numpy as jnp
from jax import lax
from jax.experimental import pallas as pl
from jax.experimental.pallas import tpu as pltpu


def _sdpa_kernel(q_ref, k_ref, v_ref, out_ref, attn_ref, *, scale, softmax_dtype):
    # q_ref: (G, TQ, Dp); k_ref/v_ref: (G, S, Dp); out_ref: (G, TQ, Dp); attn_ref: (G, TQ, S)
    q = q_ref[...] * jnp.asarray(scale, dtype=q_ref.dtype)   # fold 1/sqrt(d_k) into q (D << S)
    k = k_ref[...]
    v = v_ref[...]

    # scores[g, q, s] = sum_d q[g, q, d] * k[g, s, d] -- contract the last axis
    # of both operands so no explicit K transpose / XLU relayout is materialized.
    scores = lax.dot_general(
        q, k,
        dimension_numbers=(((2,), (2,)), ((0,), (0,))),
        preferred_element_type=jnp.float32,
    )  # (G, TQ, S), fp32

    # Numerically stable softmax over the key axis.  Max-subtract stays in fp32;
    # the S-wide elementwise chain runs in softmax_dtype (bf16 when the inputs
    # are bf16: halves vreg/VMEM traffic on v6e/v7x), row-sum accumulates fp32.
    m = jnp.max(scores, axis=-1, keepdims=True)
    e = jnp.exp((scores - m).astype(softmax_dtype))
    denom = jnp.sum(e, axis=-1, keepdims=True, dtype=jnp.float32)
    inv = pl.reciprocal(denom)             # exact: returned rows sum to 1 (fp32)
    attn = e * inv.astype(softmax_dtype)   # (G, TQ, S)

    # output[g, q, d] = sum_s attn[g, q, s] * v[g, s, d]
    out = lax.dot_general(
        attn.astype(v.dtype), v,
        dimension_numbers=(((2,), (1,)), ((0,), (0,))),
        preferred_element_type=jnp.float32,
    )  # (G, TQ, Dp), fp32

    out_ref[...] = out.astype(out_ref.dtype)
    attn_ref[...] = attn.astype(attn_ref.dtype)


def _vmem_budget_and_limit():
    """Generation-aware VMEM budget (for our own accounting) and scoped limit."""
    cap = 64 * 1024 * 1024                    # conservative default (v7x per-TC VMEM)
    try:
        info = pltpu.get_tpu_info()
        cap = int(getattr(info, "vmem_capacity_bytes", cap)) or cap
    except Exception:
        pass
    budget = cap // 2                         # pipeline blocks + in-kernel intermediates
    limit = max(32 * 1024 * 1024, (cap * 3) // 4)   # above default scoped limit, below physical
    return budget, limit


def _q_tile_candidates(S):
    """Query tiles, largest first; each divides S and respects the (8,128) sublane rule."""
    cands = [t for t in range(min(S, 512), 0, -1)
             if S % t == 0 and (t % 8 == 0 or t == S)]
    return cands or [S]


def _step_vmem_bytes(G, TQ, S, Dp, in_isz, attn_isz, smax_isz):
    """Per-grid-step VMEM footprint: double-buffered pipeline blocks plus the
    in-kernel intermediates (fp32 scores, softmax chain, fp32 PV accumulator)."""
    blocks = 2 * G * (                        # x2: double buffering
        2 * TQ * Dp * in_isz                  # q + out blocks
        + 2 * S * Dp * in_isz                 # k + v blocks (full sequence)
        + TQ * S * attn_isz                   # attn block
    )
    interm = G * (
        TQ * S * 4                            # fp32 scores
        + 2 * TQ * S * smax_isz               # e + normalized attn
        + TQ * Dp * 4                         # fp32 PV accumulator
    )
    return blocks + interm


def _choose_tiles(BH, S, Dp, in_isz, attn_isz, smax_isz, budget):
    """Pick (heads-per-step G, query tile TQ) so the footprint fits `budget`.
    Shrinks TQ (not just G) for long sequences."""
    cands = _q_tile_candidates(S)
    for TQ in cands:
        per_head = _step_vmem_bytes(1, TQ, S, Dp, in_isz, attn_isz, smax_isz)
        if per_head > budget:
            continue
        g = int(min(BH, budget // per_head))
        while BH % g != 0:                    # g must divide BH exactly
            g -= 1
        return g, TQ
    # Nothing fits even at G=1 with the smallest tile (enormous S): fall back to
    # the minimal configuration and rely on the raised vmem limit.
    return 1, cands[-1]


def scaled_dot_product_attention(query, key, value, *, attn_dtype=None):
    """query/key/value: (B, H, S, D) -> (output (B,H,S,D), attn (B,H,S,S)).

    Eval-mode forward of the PyTorch module (dropout = identity, mask=None).
    `attn_dtype=jnp.bfloat16` halves the dominant S*S attn HBM writeback for
    fp32 inputs; default keeps the module's returned dtype.
    """
    B, H, S, D = query.shape
    BH = B * H
    scale = 1.0 / math.sqrt(D)                # d_k = original head dim (pre-padding)

    if attn_dtype is None:
        attn_dtype = query.dtype
    # bf16 softmax chain only when the inputs are already bf16 (v6e/v7x have
    # bf16 VPU/EUP); fp32 inputs keep the fp32 chain for exact-ish attn.
    softmax_dtype = jnp.bfloat16 if query.dtype == jnp.bfloat16 else jnp.float32

    q = query.reshape(BH, S, D)
    k = key.reshape(BH, S, D)
    v = value.reshape(BH, S, D)

    # Lane-dense head dim: pad D up to a multiple of 128 so q/k/v loads and the
    # `out` stores are unmasked vld/vst.  Zero padding is exact: padded lanes
    # contribute 0 to QK^T and produce zero output columns sliced off below.
    Dp = D if D % 128 == 0 else ((D + 127) // 128) * 128
    if Dp != D:
        pad = ((0, 0), (0, 0), (0, Dp - D))
        q = jnp.pad(q, pad)
        k = jnp.pad(k, pad)
        v = jnp.pad(v, pad)

    in_isz = jnp.dtype(query.dtype).itemsize
    attn_isz = jnp.dtype(attn_dtype).itemsize
    smax_isz = jnp.dtype(softmax_dtype).itemsize

    budget, vmem_limit = _vmem_budget_and_limit()
    G, TQ = _choose_tiles(BH, S, Dp, in_isz, attn_isz, smax_isz, budget)

    kernel = functools.partial(_sdpa_kernel, scale=scale, softmax_dtype=softmax_dtype)

    out, attn = pl.pallas_call(
        kernel,
        out_shape=(
            jax.ShapeDtypeStruct((BH, S, Dp), query.dtype),
            jax.ShapeDtypeStruct((BH, S, S), attn_dtype),
        ),
        grid_spec=pltpu.PrefetchScalarGridSpec(
            num_scalar_prefetch=0,
            # Head-group axis outer, query-tile axis inner: the K/V block index
            # is constant across the inner loop so their DMAs are not reissued.
            grid=(BH // G, S // TQ),
            in_specs=[
                pl.BlockSpec((G, TQ, Dp), lambda g, qi: (g, qi, 0)),
                # TODO(synk): pipeline_mode=pl.Buffered(3) on K/V if profiling
                # shows an exposed K/V DMA at head-group boundaries.
                pl.BlockSpec((G, S, Dp), lambda g, qi: (g, 0, 0)),
                pl.BlockSpec((G, S, Dp), lambda g, qi: (g, 0, 0)),
            ],
            out_specs=[
                pl.BlockSpec((G, TQ, Dp), lambda g, qi: (g, qi, 0)),
                pl.BlockSpec((G, TQ, S), lambda g, qi: (g, qi, 0)),
            ],
        ),
        compiler_params=pltpu.CompilerParams(
            # Megacore-shard only on the head-group axis (v7x): splitting the
            # inner qi axis across cores would duplicate K/V DMAs and shrink
            # the attn/out write bursts.  Harmless on single-TC v5e/v6e.
            dimension_semantics=("parallel", "arbitrary"),
            vmem_limit_bytes=int(vmem_limit),
        ),
    )(q, k, v)

    if Dp != D:
        out = out[:, :, :D]
    return out.reshape(B, H, S, D), attn.reshape(B, H, S, S)


def _reference(query, key, value):
    d_k = query.shape[-1]
    scores = jnp.einsum(
        "bhqd,bhkd->bhqk",
        query.astype(jnp.float32), key.astype(jnp.float32)) / math.sqrt(d_k)
    attn = jax.nn.softmax(scores, axis=-1)
    out = jnp.einsum("bhqk,bhkd->bhqd", attn, value.astype(jnp.float32))
    return out.astype(query.dtype), attn


if __name__ == "__main__":
    B, H, S, D = 2, 4, 8, 32
    key0 = jax.random.PRNGKey(0)
    kq, kk, kv = jax.random.split(key0, 3)
    query = jax.random.normal(kq, (B, H, S, D), dtype=jnp.float32)
    keyt = jax.random.normal(kk, (B, H, S, D), dtype=jnp.float32)
    value = jax.random.normal(kv, (B, H, S, D), dtype=jnp.float32)

    out, attn = scaled_dot_product_attention(query, keyt, value)
    jax.block_until_ready((out, attn))

    ref_out, ref_attn = _reference(query, keyt, value)
    assert out.shape == (B, H, S, D) and attn.shape == (B, H, S, S)
    # Exact softmax normalization -> tight tolerance.
    assert jnp.allclose(out, ref_out, atol=1e-4, rtol=1e-4), "output mismatch"
    assert jnp.allclose(attn.astype(jnp.float32), ref_attn,
                        atol=1e-4, rtol=1e-4), "attn mismatch"

    print("KERNEL_OK")
</pallas_src>

<mosaic_0001>
module attributes {stable_mosaic.version = 11 : i64} {
  func.func @_sdpa_kernel(%arg0: i32, %arg1: i32, %arg2: memref<8x8x128xf32, #tpu.memory_space<vmem>>, %arg3: memref<8x8x128xf32, #tpu.memory_space<vmem>>, %arg4: memref<8x8x128xf32, #tpu.memory_space<vmem>>, %arg5: memref<8x8x128xf32, #tpu.memory_space<vmem>>, %arg6: memref<8x8x8xf32, #tpu.memory_space<vmem>>) attributes {dimension_semantics = [#tpu.dimension_semantics<parallel>, #tpu.dimension_semantics<arbitrary>], iteration_bounds = array<i64: 1, 1>, scalar_prefetch = 0 : i64, scratch_operands = 0 : i64, tpu.core_type = #tpu.core_type<tc>, window_params = [{transform_indices = @transform_0, window_bounds = array<i64: 8, 8, 128>}, {transform_indices = @transform_1, window_bounds = array<i64: 8, 8, 128>}, {transform_indices = @transform_2, window_bounds = array<i64: 8, 8, 128>}, {transform_indices = @transform_3, window_bounds = array<i64: 8, 8, 128>}, {transform_indices = @transform_4, window_bounds = array<i64: 8, 8, 8>}]} {
    %c0 = arith.constant 0 : index
    %c0_0 = arith.constant 0 : index
    %c0_1 = arith.constant 0 : index
    %0 = vector.load %arg2[%c0, %c0_0, %c0_1] : memref<8x8x128xf32, #tpu.memory_space<vmem>>, vector<8x8x128xf32>
    %cst = arith.constant 0.176776692 : f32
    %1 = vector.broadcast %cst : f32 to vector<8x8x128xf32>
    %2 = arith.mulf %0, %1 : vector<8x8x128xf32>
    %c0_2 = arith.constant 0 : index
    %c0_3 = arith.constant 0 : index
    %c0_4 = arith.constant 0 : index
    %3 = vector.load %arg3[%c0_2, %c0_3, %c0_4] : memref<8x8x128xf32, #tpu.memory_space<vmem>>, vector<8x8x128xf32>
    %c0_5 = arith.constant 0 : index
    %c0_6 = arith.constant 0 : index
    %c0_7 = arith.constant 0 : index
    %4 = vector.load %arg4[%c0_5, %c0_6, %c0_7] : memref<8x8x128xf32, #tpu.memory_space<vmem>>, vector<8x8x128xf32>
    %cst_8 = arith.constant dense<0.000000e+00> : vector<8x8x8xf32>
    %5 = tpu.matmul %2, %3, %cst_8 {dimension_numbers = #tpu.dot_dimension_numbers<[2], [2], [1], [1], [0, 0, 0, 1, 1, 1], [0], [0]>} : vector<8x8x128xf32>, vector<8x8x128xf32>, vector<8x8x8xf32> -> vector<8x8x8xf32>
    %cst_9 = arith.constant dense<0xFF800000> : vector<8x8xf32>
    %6 = vector.multi_reduction <maximumf>, %5, %cst_9 [2] : vector<8x8x8xf32> to vector<8x8xf32>
    %7 = vector.shape_cast %6 : vector<8x8xf32> to vector<8x8x1xf32>
    %8 = vector.broadcast %7 : vector<8x8x1xf32> to vector<8x8x8xf32>
    %9 = arith.subf %5, %8 : vector<8x8x8xf32>
    %10 = math.exp %9 : vector<8x8x8xf32>
    %cst_10 = arith.constant dense<0.000000e+00> : vector<8x8xf32>
    %11 = vector.multi_reduction <add>, %10, %cst_10 [2] : vector<8x8x8xf32> to vector<8x8xf32>
    %12 = vector.shape_cast %11 : vector<8x8xf32> to vector<8x8x1xf32>
    %13 = tpu.reciprocal %12 : vector<8x8x1xf32> -> vector<8x8x1xf32>
    %14 = vector.broadcast %13 : vector<8x8x1xf32> to vector<8x8x8xf32>
    %15 = arith.mulf %10, %14 : vector<8x8x8xf32>
    %cst_11 = arith.constant dense<0.000000e+00> : vector<8x8x128xf32>
    %16 = tpu.matmul %15, %4, %cst_11 {dimension_numbers = #tpu.dot_dimension_numbers<[2], [1], [1], [2], [0, 0, 0, 1, 1, 2], [0], [0]>} : vector<8x8x8xf32>, vector<8x8x128xf32>, vector<8x8x128xf32> -> vector<8x8x128xf32>
    %c0_12 = arith.constant 0 : index
    %c0_13 = arith.constant 0 : index
    %c0_14 = arith.constant 0 : index
    %17 = vector.load %arg5[%c0_12, %c0_13, %c0_14] : memref<8x8x128xf32, #tpu.memory_space<vmem>>, vector<8x8x128xf32>
    tpu.vector_store %arg5[%c0_12, %c0_13, %c0_14], %16 {strides = array<i32>} : memref<8x8x128xf32, #tpu.memory_space<vmem>>, vector<8x8x128xf32>,
    %c0_15 = arith.constant 0 : index
    %c0_16 = arith.constant 0 : index
    %c0_17 = arith.constant 0 : index
    %18 = vector.load %arg6[%c0_15, %c0_16, %c0_17] : memref<8x8x8xf32, #tpu.memory_space<vmem>>, vector<8x8x8xf32>
    tpu.vector_store %arg6[%c0_15, %c0_16, %c0_17], %15 {strides = array<i32>} : memref<8x8x8xf32, #tpu.memory_space<vmem>>, vector<8x8x8xf32>,
    return
  }
  func.func @transform_0(%arg0: i32, %arg1: i32) -> (i32, i32, i32) {
    %c0_i32 = arith.constant 0 : i32
    %c0_i32_0 = arith.constant 0 : i32
    return %arg0, %arg1, %c0_i32 : i32, i32, i32
  }
  func.func @transform_1(%arg0: i32, %arg1: i32) -> (i32, i32, i32) {
    %c0_i32 = arith.constant 0 : i32
    %c0_i32_0 = arith.constant 0 : i32
    %c0_i32_1 = arith.constant 0 : i32
    return %arg0, %c0_i32, %c0_i32_0 : i32, i32, i32
  }
  func.func @transform_2(%arg0: i32, %arg1: i32) -> (i32, i32, i32) {
    %c0_i32 = arith.constant 0 : i32
    %c0_i32_0 = arith.constant 0 : i32
    %c0_i32_1 = arith.constant 0 : i32
    return %arg0, %c0_i32, %c0_i32_0 : i32, i32, i32
  }
  func.func @transform_3(%arg0: i32, %arg1: i32) -> (i32, i32, i32) {
    %c0_i32 = arith.constant 0 : i32
    %c0_i32_0 = arith.constant 0 : i32
    return %arg0, %arg1, %c0_i32 : i32, i32, i32
  }
  func.func @transform_4(%arg0: i32, %arg1: i32) -> (i32, i32, i32) {
    %c0_i32 = arith.constant 0 : i32
    %c0_i32_0 = arith.constant 0 : i32
    return %arg0, %arg1, %c0_i32 : i32, i32, i32
  }
}

</mosaic_0001>

<bundles_post_ra>
// kernel: tpu_custom_call.1
= control target key start
LH: loop header
LB: loop body
LE: loop exit
PB: predicated region body
PF: predicated region fallthrough
CT: control target
= control target key end

     0   :  { %10 = vsyncpa [#allocation3], 0  ;;  %s1861_s0 = inlined_call_operand.hbm [shape: f32[8,8,128], index: 0, kind: input, shape index: {}]   ;;  %s1862_s1 = inlined_call_operand.hbm [shape: f32[8,8,128], index: 1, kind: input, shape index: {}]   ;;  %s1863_s2 = inlined_call_operand.hbm [shape: f32[8,8,128], index: 2, kind: input, shape index: {}]   ;;  %s1864_s3 = inlined_call_operand.hbm [shape: f32[8,8,128], index: 3, kind: output, shape index: {0}]   ;;  %s1865_s4 = inlined_call_operand.hbm [shape: f32[8,8,8], index: 4, kind: output, shape index: {1}]  }
   0x1   :  { %11 = vsyncpa [#allocation6], 0 }
   0x2   :  { %12 = vsyncpa [#allocation4], 0 }
   0x3   :  { %13 = vsyncpa [#allocation10], 0  ;;  %s1653_s15 = smov [#allocation5]   ;;  %s1654_s17 = smov [#allocation2]  }
   0x4   :  { %s31_s16 = sshll.u32 %s1653_s15, 4  ;;  %s19_s18 = sshll.u32 %s1654_s17, 4  ;;  %s32_s16 = int_to_ptr.vmem [resolvable:$true] %s31_s16  ;;  %s1687_s18 = int_to_ptr.vmem [resolvable:$true] %s19_s18 }
   0x5   :  { %s1535_s21 = scalar_lea.hbm %s1862_s1, 1024 }
   0x6   :  { %p1536_p0 = scmp.ne.s32.totalorder %s1862_s1, %s1535_s21  ;;  %p1539_p1 = scmp.lt.u32.totalorder %s1535_s21, %s1862_s1 }
   0x8   :  { %p1541_p2 = pnand %p1539_p1, %p1536_p0 }
   0xa   :  { %1544 = shalt.err (!%p1541_p2)
}
   0xb   :  { %s1545_s26 = scalar_lea.vmem %s32_s16, 1024  ;;  %p1550_p4 = scmp.lt.s32.totalorder %s32_s16, %s32_s16 }
   0xc   :  { %p1546_p3 = scmp.ne.s32.totalorder %s32_s16, %s1545_s26  ;;  %p1551_p5 = scmp.lt.s32.totalorder %s1545_s26, %s1545_s26 }
   0xe   :  { %p1552_p6 = por %p1551_p5, %p1550_p4 }
  0x10   :  { %p1553_p7 = pnand %p1552_p6, %p1546_p3 }
  0x12   :  { %1556 = shalt.err (!%p1553_p7)
}
  0x13   :  { %s1655_s27 = smov 128   ;;  %s1656_s28 = smov 8  }
  0x14   :  { %37 = dma.hbm_to_vmem [thread:$0]  %s1862_s1, 1024, %s32_s16, [#allocation6], %s1655_s27, %s1655_s27, %s1656_s28  }
  0x15   :  { %s1557_s7 = scalar_lea.hbm %s1861_s0, 1024 }
  0x16   :  { %p1558_p8 = scmp.ne.s32.totalorder %s1861_s0, %s1557_s7  ;;  %p1561_p9 = scmp.lt.u32.totalorder %s1557_s7, %s1861_s0 }
  0x18   :  { %p1563_p10 = pnand %p1561_p9, %p1558_p8 }
  0x1a   :  { %1566 = shalt.err (!%p1563_p10)
}
  0x1b   :  { %s1567_s12 = scalar_lea.vmem %s1687_s18, 1024  ;;  %p1572_p12 = scmp.lt.s32.totalorder %s1687_s18, %s1687_s18 }
  0x1c   :  { %p1568_p11 = scmp.ne.s32.totalorder %s1687_s18, %s1567_s12  ;;  %p1573_p13 = scmp.lt.s32.totalorder %s1567_s12, %s1567_s12 }
  0x1e   :  { %p1574_p0 = por %p1573_p13, %p1572_p12 }
  0x20   :  { %p1575_p1 = pnand %p1574_p0, %p1568_p11 }
  0x22   :  { %1578 = shalt.err (!%p1575_p1)
}
  0x23   :  { %25 = dma.hbm_to_vmem [thread:$0]  %s1861_s0, 1024, %s1687_s18, [#allocation3], %s1655_s27, %s1655_s27, %s1656_s28  }
  0x24   :  { %s1657_s14 = smov [#allocation7]   ;;  %s1579_s19 = scalar_lea.hbm %s1863_s2, 1024 }
  0x25   :  { %s43_s15 = sshll.u32 %s1657_s14, 4  ;;  %p1580_p2 = scmp.ne.s32.totalorder %s1863_s2, %s1579_s19  ;;  %s44_s15 = int_to_ptr.vmem [resolvable:$true] %s43_s15 }
  0x26   :  { %p1583_p3 = scmp.lt.u32.totalorder %s1579_s19, %s1863_s2 }
  0x28   :  { %p1585_p4 = pnand %p1583_p3, %p1580_p2 }
  0x2a   :  { %1588 = shalt.err (!%p1585_p4)
}
  0x2b   :  { %s1589_s24 = scalar_lea.vmem %s44_s15, 1024  ;;  %p1594_p6 = scmp.lt.s32.totalorder %s44_s15, %s44_s15 }
  0x2c   :  { %p1590_p5 = scmp.ne.s32.totalorder %s44_s15, %s1589_s24  ;;  %p1595_p7 = scmp.lt.s32.totalorder %s1589_s24, %s1589_s24 }
  0x2e   :  { %p1596_p8 = por %p1595_p7, %p1594_p6 }
  0x30   :  { %p1597_p9 = pnand %p1596_p8, %p1590_p5 }
  0x32   :  { %1600 = shalt.err (!%p1597_p9)
}
  0x33   :  { %49 = dma.hbm_to_vmem [thread:$0]  %s1863_s2, 1024, %s44_s15, [#allocation6], %s1655_s27, %s1655_s27, %s1656_s28  }
  0x34   :  { %1645 = dma.done.wait [#allocation3], 1024  }
  0x35   :  { %1646 = vsyncadd [#allocation3], 4294966272 }
  0x36   :  { %1647 = dma.done.wait [#allocation6], 2048  }
  0x37   :  { %1648 = vsyncadd [#allocation6], 4294965248  ;;  %v1658_v0 = vmov 0.0   ;;  %vm1659_vm0 = vmmov 0   ;;  %v75_v1 = vld [vmem:[#allocation5] sm:$0xff]  ;;  %v76_v3 = vld [vmem:[#allocation5 + $0x8] sm:$0xff] }
  0x38   :  { %1414 = vmatprep.subr.mxu0 %v1658_v0  ;;  %1416 = vmatprep.mubr.msk.f32.mxu0 %vm1659_vm0, %v1658_v0  ;;  %v59_v2 = vld [vmem:[#allocation2] sm:$0xff]  ;;  %v60_v5 = vld [vmem:[#allocation2 + $0x8] sm:$0xff]  ;;  %v61_v6 = vld [vmem:[#allocation2 + $0x10] sm:$0xff]  ;;  %vm651_vm1 = vcmask 64512   ;;  %s1660_s2 = smov [#allocation9]  }
  0x39   :  { %1419 = vmatprep.subr.mxu1 %v1658_v0  ;;  %1421 = vmatprep.mubr.msk.f32.mxu1 %vm1659_vm0, %v1658_v0  ;;  %v67_v4 = vmul.f32 0.17677669, %v59_v2  ;;  %v77_v7 = vld [vmem:[#allocation5 + $0x10] sm:$0xff]  ;;  %v68_v8 = vmul.f32 0.17677669, %v60_v5  ;;  %v78_v9 = vld [vmem:[#allocation5 + $0x18] sm:$0xff] }
  0x3a   :  { %1415 = vmatpush3.xpose.msra.mxu0 %v75_v1  ;;  %1420 = vmatpush3.xpose.msra.mxu1 %v76_v3  ;;  %v62_v10 = vld [vmem:[#allocation2 + $0x18] sm:$0xff]  ;;  %v69_v11 = vmul.f32 0.17677669, %v61_v6  ;;  %v63_v12 = vld [vmem:[#allocation2 + $0x20] sm:$0xff]  ;;  %v64_v15 = vld [vmem:[#allocation2 + $0x28] sm:$0xff]  ;;  %s1357_s25 = sshll.u32 %s1660_s2, 4  ;;  %s1358_s25 = int_to_ptr.vmem [resolvable:$true] %s1357_s25 }
  0x3b   :  { %1424 = vmatprep.subr.mxu0 %v1658_v0  ;;  %1429 = vmatprep.subr.mxu1 %v1658_v0  ;;  %v79_v13 = vld [vmem:[#allocation5 + $0x20] sm:$0xff]  ;;  %v70_v14 = vmul.f32 0.17677669, %v62_v10  ;;  %v71_v16 = vmul.f32 0.17677669, %v63_v12  ;;  %v80_v17 = vld [vmem:[#allocation5 + $0x28] sm:$0xff]  ;;  %p1606_p11 = scmp.lt.s32.totalorder %s1358_s25, %s1358_s25 }
  0x3c   :  { %v65_v18 = vld [vmem:[#allocation2 + $0x30] sm:$0xff]  ;;  %v72_v20 = vmul.f32 0.17677669, %v64_v15  ;;  %v66_v21 = vld [vmem:[#allocation2 + $0x38] sm:$0xff]  ;;  %s1601_s26 = scalar_lea.vmem %s1358_s25, 1024 }
  0x3d   :  { %1417 = vmatmul.mubr.f32.vlgmr.msra.gmra.mrb[0].mxu0 %v67_v4  ;;  %1422 = vmatmul.mubr.f32.vlgmr.msra.gmra.mrb[0].mxu1 %v68_v8  ;;  %v81_v19 = vld [vmem:[#allocation5 + $0x30] sm:$0xff]  ;;  %v73_v22 = vmul.f32 0.17677669, %v65_v18  ;;  %v82_v23 = vld [vmem:[#allocation5 + $0x38] sm:$0xff]  ;;  %v74_v24 = vmul.f32 0.17677669, %v66_v21  ;;  %p1602_p10 = scmp.ne.s32.totalorder %s1358_s25, %s1601_s26  ;;  %p1607_p12 = scmp.lt.s32.totalorder %s1601_s26, %s1601_s26 }
  0x3e   :  { %1425 = vmatpush3.xpose.msra.mxu0 %v77_v7  ;;  %1426 = vmatprep.mubr.msk.f32.mxu0 %vm1659_vm0, %v1658_v0 }
  0x3f   :  { %1434 = vmatprep.subr.mxu0 %v1658_v0  ;;  %1430 = vmatpush3.xpose.msra.mxu1 %v78_v9  ;;  %p1608_p13 = por %p1607_p12, %p1606_p11 }
  0x40   :  { %1431 = vmatprep.mubr.msk.f32.mxu1 %vm1659_vm0, %v1658_v0  ;;  %1439 = vmatprep.subr.mxu1 %v1658_v0 }
  0x41   :  { %1427 = vmatmul.mubr.f32.vlgmr.msra.gmra.mrb[2].mxu0 %v69_v11  ;;  %p1609_p0 = pnand %p1608_p13, %p1602_p10 }
  0x42   :  { %1435 = vmatpush3.xpose.msra.mxu0 %v79_v13  ;;  %1436 = vmatprep.mubr.msk.f32.mxu0 %vm1659_vm0, %v1658_v0 }
  0x43   :  { %1432 = vmatmul.mubr.f32.vlgmr.msra.gmra.mrb[2].mxu1 %v70_v14  ;;  %1444 = vmatprep.subr.mxu0 %v1658_v0 }
  0x44   :  { %1440 = vmatpush3.xpose.msra.mxu1 %v80_v17  ;;  %1441 = vmatprep.mubr.msk.f32.mxu1 %vm1659_vm0, %v1658_v0 }
  0x45   :  { %1437 = vmatmul.mubr.f32.vlgmr.msra.gmra.mrb[4].mxu0 %v71_v16  ;;  %1449 = vmatprep.subr.mxu1 %v1658_v0 }
  0x46   :  { %1445 = vmatpush3.xpose.msra.mxu0 %v81_v19  ;;  %1446 = vmatprep.mubr.msk.f32.mxu0 %vm1659_vm0, %v1658_v0 }
  0x47   :  { %1442 = vmatmul.mubr.f32.vlgmr.msra.gmra.mrb[4].mxu1 %v72_v20  ;;  %1454 = vmatprep.subr.mxu0 %v1658_v0 }
  0x48   :  { %1450 = vmatpush3.xpose.msra.mxu1 %v82_v23  ;;  %1451 = vmatprep.mubr.msk.f32.mxu1 %vm1659_vm0, %v1658_v0 }
  0x49   :  { %1447 = vmatmul.mubr.f32.vlgmr.msra.gmra.mrb[6].mxu0 %v73_v22  ;;  %1459 = vmatprep.subr.mxu1 %v1658_v0 }
  0x4a   :  { %1456 = vmatprep.mubr.msk.f32.mxu0 %vm1659_vm0, %v1658_v0 }
  0x4b   :  { %1452 = vmatmul.mubr.f32.vlgmr.msra.gmra.mrb[6].mxu1 %v74_v24 }
  0x4c   :  { %1461 = vmatprep.mubr.msk.f32.mxu1 %vm1659_vm0, %v1658_v0 }
 0x110   :  { %v157_v25 = vpop.f32.mrb[0].mxu0  ;;  %v227_v26 = vpop.f32.mrb[0].mxu1 }
 0x111   :  { %v1418_v27 = vpop.f32.mrb[1].mxu0  ;;  %v652_v28 = vsel %vm651_vm1, %v157_v25, -inf  ;;  %v1423_v29 = vpop.f32.mrb[1].mxu1  ;;  %v655_v30 = vsel %vm651_vm1, %v227_v26, -inf }
 0x112   :  { %653 = vmax.xlane.f32.xlu0 %v652_v28  ;;  %v84_v27 = vld [vmem:[#allocation7 + $0x8] sm:$0xff] }
 0x113   :  { %1460 = vmatpush3.msra.mxu1 %v84_v27 }
 0x114   :  { %v297_v31 = vpop.f32.mrb[2].mxu0  ;;  %1469 = vmatprep.subr.mxu1 %v1658_v0 }
 0x115   :  { %v1428_v32 = vpop.f32.mrb[3].mxu0  ;;  %v658_v33 = vsel %vm651_vm1, %v297_v31, -inf }
 0x116   :  { %656 = vmax.xlane.f32.xlu0 %v655_v30  ;;  %659 = vmax.xlane.f32.xlu1 %v658_v33  ;;  %v367_v34 = vpop.f32.mrb[2].mxu1 }
 0x117   :  { %v1433_v35 = vpop.f32.mrb[3].mxu1  ;;  %v661_v36 = vsel %vm651_vm1, %v367_v34, -inf }
 0x118   :  { %v437_v37 = vpop.f32.mrb[4].mxu0 }
 0x119   :  { %v664_v38 = vsel %vm651_vm1, %v437_v37, -inf  ;;  %v1438_v39 = vpop.f32.mrb[5].mxu0 }
 0x11a   :  { %662 = vmax.xlane.f32.xlu1 %v661_v36  ;;  %665 = vmax.xlane.f32.xlu0 %v664_v38  ;;  %v507_v40 = vpop.f32.mrb[4].mxu1  ;;  %v85_v36 = vld [vmem:[#allocation7 + $0x10] sm:$0xff] }
 0x11b   :  { %v1443_v41 = vpop.f32.mrb[5].mxu1  ;;  %v667_v42 = vsel %vm651_vm1, %v507_v40, -inf }
 0x11c   :  { %v577_v43 = vpop.f32.mrb[6].mxu0 }
 0x11d   :  { %v670_v44 = vsel %vm651_vm1, %v577_v43, -inf  ;;  %v1448_v45 = vpop.f32.mrb[7].mxu0 }
 0x11e   :  { %668 = vmax.xlane.f32.xlu1 %v667_v42  ;;  %671 = vmax.xlane.f32.xlu0 %v670_v44  ;;  %v647_v46 = vpop.f32.mrb[6].mxu1  ;;  %v86_v42 = vld [vmem:[#allocation7 + $0x18] sm:$0xff]  ;;  %v87_v44 = vld [vmem:[#allocation7 + $0x20] sm:$0xff] }
 0x11f   :  { %v1453_v47 = vpop.f32.mrb[7].mxu1  ;;  %v673_v48 = vsel %vm651_vm1, %v647_v46, -inf }
 0x122   :  { %674 = vmax.xlane.f32.xlu1 %v673_v48  ;;  %v88_v48 = vld [vmem:[#allocation7 + $0x28] sm:$0xff] }
 0x19f   :  { %v654_v49 = vpop.xlane.xlu0 %653 }
 0x1a0   :  { %v676_v50 = vsub.f32 %v157_v25, %v654_v49 }
 0x1a2   :  { %v684_v51 = vmul.f32 1.442695, %v676_v50  ;;  %v89_v50 = vld [vmem:[#allocation7 + $0x30] sm:$0xff] }
 0x1a3   :  { %v657_v52 = vpop.xlane.xlu0 %656  ;;  %v660_v53 = vpop.xlane.xlu1 %659 }
 0x1a4   :  { %1503 = vpow2.f32 %v684_v51  ;;  %v677_v54 = vsub.f32 %v227_v26, %v657_v52  ;;  %v678_v55 = vsub.f32 %v297_v31, %v660_v53  ;;  %v83_v26 = vld [vmem:[#allocation7] sm:$0xff] }
 0x1a5   :  { %1455 = vmatpush3.msra.mxu0 %v83_v26 }
 0x1a6   :  { %v686_v56 = vmul.f32 1.442695, %v677_v54  ;;  %v688_v57 = vmul.f32 1.442695, %v678_v55  ;;  %1464 = vmatprep.subr.mxu0 %v1658_v0  ;;  %v90_v54 = vld [vmem:[#allocation7 + $0x38] sm:$0xff] }
 0x1a7   :  { %v663_v58 = vpop.xlane.xlu1 %662  ;;  %v666_v59 = vpop.xlane.xlu0 %665 }
 0x1a8   :  { %1505 = vpow2.f32 %v686_v56  ;;  %v679_v60 = vsub.f32 %v367_v34, %v663_v58  ;;  %v680_v61 = vsub.f32 %v437_v37, %v666_v59 }
 0x1a9   :  { %1507 = vpow2.f32 %v688_v57 }
 0x1aa   :  { %v690_v62 = vmul.f32 1.442695, %v679_v60  ;;  %v692_v63 = vmul.f32 1.442695, %v680_v61 }
 0x1ab   :  { %v669_v1 = vpop.xlane.xlu1 %668  ;;  %v672_v2 = vpop.xlane.xlu0 %671 }
 0x1ac   :  { %1509 = vpow2.f32 %v690_v62  ;;  %v681_v3 = vsub.f32 %v507_v40, %v669_v1  ;;  %v682_v4 = vsub.f32 %v577_v43, %v672_v2 }
 0x1ad   :  { %1511 = vpow2.f32 %v692_v63 }
 0x1ae   :  { %v1504_v5 = vpop.eup %1503  ;;  %v694_v6 = vmul.f32 1.442695, %v681_v3  ;;  %v696_v7 = vmul.f32 1.442695, %v682_v4 }
 0x1af   :  { %v675_v8 = vpop.xlane.xlu1 %674  ;;  %v700_v9 = vsel %vm651_vm1, %v1504_v5, 0.0 }
 0x1b0   :  { %1513 = vpow2.f32 %v694_v6  ;;  %v683_v10 = vsub.f32 %v647_v46, %v675_v8  ;;  %701 = vadd.xlane.f32.xlu0 %v700_v9 }
 0x1b1   :  { %1515 = vpow2.f32 %v696_v7 }
 0x1b2   :  { %v1506_v11 = vpop.eup %1505  ;;  %v698_v12 = vmul.f32 1.442695, %v683_v10 }
 0x1b3   :  { %v1508_v13 = vpop.eup %1507  ;;  %v703_v14 = vsel %vm651_vm1, %v1506_v11, 0.0 }
 0x1b4   :  { %1517 = vpow2.f32 %v698_v12  ;;  %704 = vadd.xlane.f32.xlu1 %v703_v14  ;;  %v706_v15 = vsel %vm651_vm1, %v1508_v13, 0.0 }
 0x1b5   :  { %707 = vadd.xlane.f32.xlu0 %v706_v15 }
 0x1b6   :  { %v1510_v16 = vpop.eup %1509 }
 0x1b7   :  { %v1512_v17 = vpop.eup %1511  ;;  %v709_v18 = vsel %vm651_vm1, %v1510_v16, 0.0 }
 0x1b8   :  { %710 = vadd.xlane.f32.xlu1 %v709_v18  ;;  %v712_v19 = vsel %vm651_vm1, %v1512_v17, 0.0 }
 0x1b9   :  { %713 = vadd.xlane.f32.xlu0 %v712_v19 }
 0x1ba   :  { %v1782_v20 = vpop.eup %1513 }
 0x1bb   :  { %v1784_v21 = vpop.eup %1515  ;;  %v715_v22 = vsel %vm651_vm1, %v1782_v20, 0.0 }
 0x1bc   :  { %716 = vadd.xlane.f32.xlu1 %v715_v22  ;;  %v718_v23 = vsel %vm651_vm1, %v1784_v21, 0.0 }
 0x1bd   :  { %719 = vadd.xlane.f32.xlu0 %v718_v23 }
 0x1be   :  { %v1790_v24 = vpop.eup %1517 }
 0x1bf   :  { %v721_v25 = vsel %vm651_vm1, %v1790_v24, 0.0 }
 0x1c0   :  { %722 = vadd.xlane.f32.xlu1 %v721_v25 }
 0x23d   :  { %v702_v28 = vpop.xlane.xlu0 %701 }
 0x23e   :  { %1519 = vrcp.f32 %v702_v28 }
 0x241   :  { %v705_v29 = vpop.xlane.xlu1 %704 }
 0x242   :  { %1521 = vrcp.f32 %v705_v29  ;;  %v708_v30 = vpop.xlane.xlu0 %707 }
 0x243   :  { %1523 = vrcp.f32 %v708_v30 }
 0x245   :  { %v711_v31 = vpop.xlane.xlu1 %710 }
 0x246   :  { %1525 = vrcp.f32 %v711_v31  ;;  %v714_v32 = vpop.xlane.xlu0 %713 }
 0x247   :  { %1527 = vrcp.f32 %v714_v32 }
 0x248   :  { %v1520_v33 = vpop.eup %1519 }
 0x249   :  { %v732_v34 = vmul.f32 %v1520_v33, %v1504_v5  ;;  %v717_v35 = vpop.xlane.xlu1 %716 }
 0x24a   :  { %1529 = vrcp.f32 %v717_v35  ;;  %v720_v37 = vpop.xlane.xlu0 %719 }
 0x24b   :  { %1332 = vst.msk [vmem:[#allocation9] sm:$0xff] %vm651_vm1, %v732_v34  ;;  %1531 = vrcp.f32 %v720_v37  ;;  %1457 = vmatmul.mubr.msk.f32.vlgmr.msra.gmra.mrb[8].mxu0 %vm651_vm1, %v732_v34 }
 0x24c   :  { %v1522_v38 = vpop.eup %1521  ;;  %1465 = vmatpush3.msra.mxu0 %v85_v36  ;;  %1466 = vmatprep.mubr.msk.f32.mxu0 %vm1659_vm0, %v1658_v0 }
 0x24d   :  { %v1524_v39 = vpop.eup %1523  ;;  %v733_v40 = vmul.f32 %v1522_v38, %v1506_v11  ;;  %v723_v41 = vpop.xlane.xlu1 %722  ;;  %1474 = vmatprep.subr.mxu0 %v1658_v0 }
 0x24e   :  { %v734_v43 = vmul.f32 %v1524_v39, %v1508_v13  ;;  %1533 = vrcp.f32 %v723_v41 }
 0x24f   :  { %1333 = vst.msk [vmem:[#allocation9 + $0x8] sm:$0xff] %vm651_vm1, %v733_v40  ;;  %1462 = vmatmul.mubr.msk.f32.vlgmr.msra.gmra.mrb[8].mxu1 %vm651_vm1, %v733_v40 }
 0x250   :  { %v1526_v45 = vpop.eup %1525  ;;  %1334 = vst.msk [vmem:[#allocation9 + $0x10] sm:$0xff] %vm651_vm1, %v734_v43  ;;  %1467 = vmatmul.mubr.msk.f32.vlgmr.msra.gmra.mrb[10].mxu0 %vm651_vm1, %v734_v43  ;;  %1470 = vmatpush3.msra.mxu1 %v86_v42 }
 0x251   :  { %v1528_v46 = vpop.eup %1527  ;;  %v735_v47 = vmul.f32 %v1526_v45, %v1510_v16  ;;  %1471 = vmatprep.mubr.msk.f32.mxu1 %vm1659_vm0, %v1658_v0  ;;  %1475 = vmatpush3.msra.mxu0 %v87_v44 }
 0x252   :  { %v736_v49 = vmul.f32 %v1528_v46, %v1512_v17  ;;  %1476 = vmatprep.mubr.msk.f32.mxu0 %vm1659_vm0, %v1658_v0  ;;  %1479 = vmatprep.subr.mxu1 %v1658_v0 }
 0x253   :  { %1335 = vst.msk [vmem:[#allocation9 + $0x18] sm:$0xff] %vm651_vm1, %v735_v47  ;;  %1472 = vmatmul.mubr.msk.f32.vlgmr.msra.gmra.mrb[10].mxu1 %vm651_vm1, %v735_v47  ;;  %1484 = vmatprep.subr.mxu0 %v1658_v0 }
 0x254   :  { %v1530_v51 = vpop.eup %1529  ;;  %1336 = vst.msk [vmem:[#allocation9 + $0x20] sm:$0xff] %vm651_vm1, %v736_v49  ;;  %1477 = vmatmul.mubr.msk.f32.vlgmr.msra.gmra.mrb[12].mxu0 %vm651_vm1, %v736_v49  ;;  %1480 = vmatpush3.msra.mxu1 %v88_v48 }
 0x255   :  { %v1532_v52 = vpop.eup %1531  ;;  %v737_v53 = vmul.f32 %v1530_v51, %v1782_v20  ;;  %1481 = vmatprep.mubr.msk.f32.mxu1 %vm1659_vm0, %v1658_v0  ;;  %1485 = vmatpush3.msra.mxu0 %v89_v50 }
 0x256   :  { %v738_v55 = vmul.f32 %v1532_v52, %v1784_v21  ;;  %1486 = vmatprep.mubr.msk.f32.mxu0 %vm1659_vm0, %v1658_v0  ;;  %1489 = vmatprep.subr.mxu1 %v1658_v0 }
 0x257   :  { %1337 = vst.msk [vmem:[#allocation9 + $0x28] sm:$0xff] %vm651_vm1, %v737_v53  ;;  %1482 = vmatmul.mubr.msk.f32.vlgmr.msra.gmra.mrb[12].mxu1 %vm651_vm1, %v737_v53 }
 0x258   :  { %v1534_v56 = vpop.eup %1533  ;;  %1338 = vst.msk [vmem:[#allocation9 + $0x30] sm:$0xff] %vm651_vm1, %v738_v55  ;;  %1487 = vmatmul.mubr.msk.f32.vlgmr.msra.gmra.mrb[14].mxu0 %vm651_vm1, %v738_v55  ;;  %1490 = vmatpush3.msra.mxu1 %v90_v54 }
 0x259   :  { %v739_v57 = vmul.f32 %v1534_v56, %v1790_v24  ;;  %1491 = vmatprep.mubr.msk.f32.mxu1 %vm1659_vm0, %v1658_v0 }
 0x25b   :  { %1339 = vst.msk [vmem:[#allocation9 + $0x38] sm:$0xff] %vm651_vm1, %v739_v57  ;;  %1492 = vmatmul.mubr.msk.f32.vlgmr.msra.gmra.mrb[14].mxu1 %vm651_vm1, %v739_v57 }
 0x25c   :  { %1612 = shalt.err (!%p1609_p0)
}
 0x25d   :  { %s1613_s5 = scalar_lea.hbm %s1865_s4, 1024 }
 0x25e   :  { %p1614_p1 = scmp.ne.s32.totalorder %s1865_s4, %s1613_s5  ;;  %p1617_p2 = scmp.lt.u32.totalorder %s1613_s5, %s1865_s4 }
 0x260   :  { %p1619_p3 = pnand %p1617_p2, %p1614_p1 }
 0x262   :  { %1622 = shalt.err (!%p1619_p3)
}
 0x263   :  { %1363 = dma.vmem_to_hbm [thread:$0]  %s1358_s25, 1024, %s1865_s4, [#allocation10], %s1655_s27, %s1655_s27, %s1656_s28  }
 0x264   :  { %s1661_s12 = smov [#allocation8]  }
 0x265   :  { %s1345_s1 = sshll.u32 %s1661_s12, 4  ;;  %s1346_s1 = int_to_ptr.vmem [resolvable:$true] %s1345_s1 }
 0x266   :  { %s1623_s4 = scalar_lea.vmem %s1346_s1, 1024  ;;  %p1628_p5 = scmp.lt.s32.totalorder %s1346_s1, %s1346_s1 }
 0x267   :  { %p1624_p4 = scmp.ne.s32.totalorder %s1346_s1, %s1623_s4  ;;  %p1629_p6 = scmp.lt.s32.totalorder %s1623_s4, %s1623_s4 }
 0x269   :  { %p1630_p7 = por %p1629_p6, %p1628_p5 }
 0x26b   :  { %p1631_p8 = pnand %p1630_p7, %p1624_p4 }
 0x31e   :  { %v809_v0 = vpop.f32.mrb[8].mxu0 }
 0x31f   :  { %1324 = vst [vmem:[#allocation8] sm:$0xff] %v809_v0  ;;  %v1458_v58 = vpop.f32.mrb[9].mxu0 }
 0x322   :  { %v882_v59 = vpop.f32.mrb[8].mxu1 }
 0x323   :  { %1325 = vst [vmem:[#allocation8 + $0x8] sm:$0xff] %v882_v59  ;;  %v955_v60 = vpop.f32.mrb[10].mxu0  ;;  %v1463_v61 = vpop.f32.mrb[9].mxu1 }
 0x324   :  { %1326 = vst [vmem:[#allocation8 + $0x10] sm:$0xff] %v955_v60  ;;  %v1468_v62 = vpop.f32.mrb[11].mxu0 }
 0x326   :  { %v1028_v63 = vpop.f32.mrb[10].mxu1 }
 0x327   :  { %1327 = vst [vmem:[#allocation8 + $0x18] sm:$0xff] %v1028_v63  ;;  %v1101_v1 = vpop.f32.mrb[12].mxu0  ;;  %v1473_v2 = vpop.f32.mrb[11].mxu1 }
 0x328   :  { %1328 = vst [vmem:[#allocation8 + $0x20] sm:$0xff] %v1101_v1  ;;  %v1478_v3 = vpop.f32.mrb[13].mxu0 }
 0x32a   :  { %v1174_v4 = vpop.f32.mrb[12].mxu1 }
 0x32b   :  { %1329 = vst [vmem:[#allocation8 + $0x28] sm:$0xff] %v1174_v4  ;;  %v1247_v5 = vpop.f32.mrb[14].mxu0  ;;  %v1483_v6 = vpop.f32.mrb[13].mxu1 }
 0x32c   :  { %1330 = vst [vmem:[#allocation8 + $0x30] sm:$0xff] %v1247_v5  ;;  %v1488_v7 = vpop.f32.mrb[15].mxu0 }
 0x32e   :  { %v1320_v8 = vpop.f32.mrb[14].mxu1 }
 0x32f   :  { %1331 = vst [vmem:[#allocation8 + $0x38] sm:$0xff] %v1320_v8  ;;  %v1493_v9 = vpop.f32.mrb[15].mxu1 }
 0x330   :  { %1634 = shalt.err (!%p1631_p8)
}
 0x331   :  { %s1635_s15 = scalar_lea.hbm %s1864_s3, 1024 }
 0x332   :  { %p1636_p9 = scmp.ne.s32.totalorder %s1864_s3, %s1635_s15  ;;  %p1639_p10 = scmp.lt.u32.totalorder %s1635_s15, %s1864_s3 }
 0x334   :  { %p1641_p11 = pnand %p1639_p10, %p1636_p9 }
 0x336   :  { %1644 = shalt.err (!%p1641_p11)
}
 0x337   :  { %1351 = dma.vmem_to_hbm [thread:$0]  %s1346_s1, 1024, %s1864_s3, [#allocation4], %s1655_s27, %s1655_s27, %s1656_s28  }
 0x338   :  { %1649 = dma.done.wait [#allocation4], 1024  }
 0x339   :  { %1650 = vsyncadd [#allocation4], 4294966272 }
 0x33a   :  { %1651 = dma.done.wait [#allocation10], 1024  }
 0x33b   :  { %1652 = vsyncadd [#allocation10], 4294966272 }
 0x33c   :  { %1370 = vsyncpa [#allocation3], 1 }
 0x33d   :  { %1371 = vsyncpa [#allocation6], 1 }
 0x33e   :  { %1372 = vsyncpa [#allocation4], 1 }
 0x33f   :  { %1373 = vsyncpa [#allocation10], 1 }

</bundles_post_ra>
